<compile_context>
chip_gen: v7x
topology: tpu7x:2x2x1
jax: 0.10.0
libtpu: 0.0.40
codegen_flags: <defaults>
</compile_context>

<pallas_src>
import jax
import jax.numpy as jnp
from jax import lax
from jax.experimental import pallas as pl
from jax.experimental.pallas import tpu as pltpu

_EPS = 1e-5  # F.layer_norm default
_LANE_TILE_CANDIDATES = (2048, 1024, 512, 256, 128)
_MIN_GRID_STEPS = 8


def _ln_kernel(x_ref, o_ref):
    """Layer-norm over the second-to-last (sublane / channel) axis of the block."""
    x = x_ref[...].astype(jnp.float32)
    c = x.shape[-2]
    inv_c = 1.0 / c
    mean = jnp.sum(x, axis=-2, keepdims=True) * inv_c
    centered = x - mean
    var = jnp.sum(centered * centered, axis=-2, keepdims=True) * inv_c
    o_ref[...] = (centered * lax.rsqrt(var + _EPS)).astype(o_ref.dtype)


def _vmem_budget():
    """(per-call footprint cap bytes, vmem_limit_bytes), gated on chip VMEM."""
    try:
        capacity = int(pltpu.get_tpu_info().vmem_capacity_bytes)
    except Exception:
        capacity = 64 * 1024 * 1024  # be conservative (v7x-sized) if query fails
    if capacity >= 100 * 1024 * 1024:
        # v5e / v6e: 128 MiB physical -> generous blocks, raised scoped limit.
        return 56 * 1024 * 1024, 64 * 1024 * 1024
    # v7x: 64 MiB physical, 32 MiB scoped default -> stay well inside it.
    return 22 * 1024 * 1024, 32 * 1024 * 1024


def _pick_block(n, c, h, itemsize, footprint_cap_bytes):
    """Choose (TB_N, TH) for block (TB_N, C, TH)."""
    # Per-element VMEM cost: input+output double-buffered (4 * itemsize) plus
    # ~3 f32 temporaries materialized inside the kernel body (x, centered, out).
    bytes_per_elem = 4 * itemsize + 12
    max_elems = max(footprint_cap_bytes // bytes_per_elem, c * min(h, 128))

    # Lane tile: multiple of 128 (<= H) or the full (small) H extent.
    if h < 128:
        th = h
    else:
        th = 128
        for cand in _LANE_TILE_CANDIDATES:
            if cand <= h and c * cand <= max_elems:
                th = cand
                break

    # Batch tile: fill the remaining budget with batch rows.
    tb_n = max(1, min(n, max_elems // (c * th)))

    # Keep enough grid steps for double-buffering / megacore sharding.
    def steps(tb, t):
        return pl.cdiv(n, tb) * pl.cdiv(h, t)

    while steps(tb_n, th) < _MIN_GRID_STEPS:
        if tb_n > 1:
            tb_n = max(1, tb_n // 2)
        elif th >= 256:
            th //= 2
        else:
            break
    return tb_n, th


def output_projection_1d(x: jax.Array, normalize: bool = False) -> jax.Array:
    """Pallas implementation of OutputProjection1D.forward.

    Args:
      x: (N, C, H) array.
      normalize: if True, layer-norm over the C axis (eps=1e-5, no affine).
    """
    if not normalize:
        return x

    n, c, h = x.shape
    itemsize = jnp.dtype(x.dtype).itemsize
    footprint_cap, vmem_limit = _vmem_budget()
    tb_n, th = _pick_block(n, c, h, itemsize, footprint_cap)

    grid = (pl.cdiv(n, tb_n), pl.cdiv(h, th))
    block = (tb_n, c, th)

    return pl.pallas_call(
        _ln_kernel,
        out_shape=jax.ShapeDtypeStruct((n, c, h), x.dtype),
        grid_spec=pltpu.PrefetchScalarGridSpec(
            num_scalar_prefetch=0,
            grid=grid,
            in_specs=[pl.BlockSpec(block, lambda i, j: (i, 0, j))],
            out_specs=pl.BlockSpec(block, lambda i, j: (i, 0, j)),
        ),
        compiler_params=pltpu.CompilerParams(
            dimension_semantics=("parallel", "parallel"),
            vmem_limit_bytes=int(vmem_limit),
        ),
    )(x)


def _reference_layernorm_over_c(x):
    mean = jnp.mean(x, axis=1, keepdims=True)
    var = jnp.mean((x - mean) ** 2, axis=1, keepdims=True)
    return (x - mean) / jnp.sqrt(var + _EPS)


if __name__ == "__main__":
    key = jax.random.PRNGKey(0)
    k1, k2, k3 = jax.random.split(key, 3)

    # --- Small module-typical shape: H < 128 (full-H block, masked lane stores). ---
    N, C, H = 2, 4, 16
    x = jax.random.normal(k1, (N, C, H), dtype=jnp.float32)

    # normalize=False path (identity)
    y_id = jax.block_until_ready(output_projection_1d(x, normalize=False))
    assert y_id.shape == (N, C, H)
    assert jnp.allclose(y_id, x)

    # normalize=True path
    y = jax.block_until_ready(output_projection_1d(x, normalize=True))
    assert y.shape == (N, C, H)
    ref = _reference_layernorm_over_c(x)
    assert jnp.allclose(y, ref, atol=1e-5, rtol=1e-5)

    # --- Lane-aligned H (multiple of 128 but not 256): multi-tile direct path. ---
    N2, C2, H2 = 2, 8, 384
    x2 = jax.random.normal(k2, (N2, C2, H2), dtype=jnp.float32)
    y2 = jax.block_until_ready(output_projection_1d(x2, normalize=True))
    ref2 = _reference_layernorm_over_c(x2)
    assert y2.shape == (N2, C2, H2)
    assert jnp.allclose(y2, ref2, atol=1e-5, rtol=1e-5)

    # --- Unaligned H > 128: exercises the masked boundary block (cdiv grid). ---
    N3, C3, H3 = 2, 6, 200
    x3 = jax.random.normal(k3, (N3, C3, H3), dtype=jnp.float32)
    y3 = jax.block_until_ready(output_projection_1d(x3, normalize=True))
    ref3 = _reference_layernorm_over_c(x3)
    assert y3.shape == (N3, C3, H3)
    assert jnp.allclose(y3, ref3, atol=1e-5, rtol=1e-5)

    print("KERNEL_OK")
</pallas_src>

<mosaic_0001>
module attributes {stable_mosaic.version = 11 : i64} {
  func.func @_ln_kernel(%arg0: i32, %arg1: i32, %arg2: memref<1x4x16xf32, #tpu.memory_space<vmem>>, %arg3: memref<1x4x16xf32, #tpu.memory_space<vmem>>) attributes {dimension_semantics = [#tpu.dimension_semantics<parallel>, #tpu.dimension_semantics<parallel>], iteration_bounds = array<i64: 2, 1>, scalar_prefetch = 0 : i64, scratch_operands = 0 : i64, tpu.core_type = #tpu.core_type<tc>, window_params = [{transform_indices = @transform_0, window_bounds = array<i64: 1, 4, 16>}, {transform_indices = @transform_1, window_bounds = array<i64: 1, 4, 16>}]} {
    %c0 = arith.constant 0 : index
    %c0_0 = arith.constant 0 : index
    %c0_1 = arith.constant 0 : index
    %0 = vector.load %arg2[%c0, %c0_0, %c0_1] : memref<1x4x16xf32, #tpu.memory_space<vmem>>, vector<1x4x16xf32>
    %cst = arith.constant dense<0.000000e+00> : vector<1x16xf32>
    %1 = vector.multi_reduction <add>, %0, %cst [1] : vector<1x4x16xf32> to vector<1x16xf32>
    %2 = vector.shape_cast %1 : vector<1x16xf32> to vector<1x1x16xf32>
    %cst_2 = arith.constant 2.500000e-01 : f32
    %3 = vector.broadcast %cst_2 : f32 to vector<1x1x16xf32>
    %4 = arith.mulf %2, %3 : vector<1x1x16xf32>
    %5 = vector.broadcast %4 : vector<1x1x16xf32> to vector<1x4x16xf32>
    %6 = arith.subf %0, %5 : vector<1x4x16xf32>
    %7 = arith.mulf %6, %6 : vector<1x4x16xf32>
    %cst_3 = arith.constant dense<0.000000e+00> : vector<1x16xf32>
    %8 = vector.multi_reduction <add>, %7, %cst_3 [1] : vector<1x4x16xf32> to vector<1x16xf32>
    %9 = vector.shape_cast %8 : vector<1x16xf32> to vector<1x1x16xf32>
    %cst_4 = arith.constant 2.500000e-01 : f32
    %10 = vector.broadcast %cst_4 : f32 to vector<1x1x16xf32>
    %11 = arith.mulf %9, %10 : vector<1x1x16xf32>
    %cst_5 = arith.constant 9.99999974E-6 : f32
    %12 = vector.broadcast %cst_5 : f32 to vector<1x1x16xf32>
    %13 = arith.addf %11, %12 : vector<1x1x16xf32>
    %14 = math.rsqrt %13 : vector<1x1x16xf32>
    %15 = vector.broadcast %14 : vector<1x1x16xf32> to vector<1x4x16xf32>
    %16 = arith.mulf %6, %15 : vector<1x4x16xf32>
    %c0_6 = arith.constant 0 : index
    %c0_7 = arith.constant 0 : index
    %c0_8 = arith.constant 0 : index
    %17 = vector.load %arg3[%c0_6, %c0_7, %c0_8] : memref<1x4x16xf32, #tpu.memory_space<vmem>>, vector<1x4x16xf32>
    tpu.vector_store %arg3[%c0_6, %c0_7, %c0_8], %16 {strides = array<i32>} : memref<1x4x16xf32, #tpu.memory_space<vmem>>, vector<1x4x16xf32>,
    return
  }
  func.func @transform_0(%arg0: i32, %arg1: i32) -> (i32, i32, i32) {
    %c0_i32 = arith.constant 0 : i32
    %c0_i32_0 = arith.constant 0 : i32
    return %arg0, %c0_i32, %arg1 : i32, i32, i32
  }
  func.func @transform_1(%arg0: i32, %arg1: i32) -> (i32, i32, i32) {
    %c0_i32 = arith.constant 0 : i32
    %c0_i32_0 = arith.constant 0 : i32
    return %arg0, %c0_i32, %arg1 : i32, i32, i32
  }
}

</mosaic_0001>

<bundles_post_ra>
// kernel: tpu_custom_call.1
= control target key start
LH: loop header
LB: loop body
LE: loop exit
PB: predicated region body
PF: predicated region fallthrough
CT: control target
= control target key end

     0   :  { %6 = vsyncpa [#allocation3], 0  ;;  %s646_s0 = inlined_call_operand.hbm [shape: f32[2,4,16], index: 0, kind: input, shape index: {}]   ;;  %s647_s1 = inlined_call_operand.hbm [shape: f32[2,4,16], index: 1, kind: output, shape index: {}]  }
   0x1   :  { %8 = vsyncpa [#allocation3 + $0x1], 0 }
   0x2   :  { %9 = vsyncpa [#allocation4], 0 }
   0x3   :  { %11 = vsyncpa [#allocation4 + $0x1], 0  ;;  %s471_s6 = smov 0   ;;  %s473_s7 = smov 0  }
   0x4   :  { %s475_s8 = smov 0   ;;  %s477_s9 = smov 0  }
   0x5   :  { %s479_s10 = smov 0   ;;  %s481_s11 = smov 0  }
   0x6 LB: > { %s268_s12 = sadd.s32 4294967295, %s457_s11   ;;  %s269_s13 = sadd.s32 4294967294, %s457_s11   ;;  %s457_s11 = sphi %s481_s11, %s17_s11   ;;  %s453_s10 = sphi %s479_s10, %s663_s10   ;;  %s449_s9 = sphi %s477_s9, %s662_s9   ;;  %s445_s8 = sphi %s475_s8, %s661_s8   ;;  %s441_s7 = sphi %s473_s7, %s660_s7   ;;  %s437_s6 = sphi %s471_s6, %s659_s6  }
   0x7   : > { %s29_s14 = sadd.s32 1, %s453_s10  ;;  %s38_s15 = sadd.s32 1, %s445_s8 }
   0x8   : > { %p31_p0 = scmp.ge.s32.totalorder %s29_s14, 2  ;;  %p45_p1 = scmp.ne.s32.totalorder %s445_s8, %s441_s7 }
   0x9   : > { %p46_p2 = scmp.eq.s32.totalorder %s457_s11, 0  ;;  %p51_p3 = scmp.ne.s32.totalorder %s441_s7, %s437_s6 }
   0xa   : > { %s665_s14 = smov (%p31_p0, %s29_s14), 0  ;;  %p52_p5 = scmp.eq.s32.totalorder %s268_s12, 0 }
   0xb   : > { %p512_p4 = por %p46_p2, %p45_p1  ;;  %s33_s17 = ssub.s32 %s453_s10, %s665_s14 }
   0xc   : > { %p77_p6 = scmp.eq.s32.totalorder %s268_s12, 1  ;;  %p36_p7 = scmp.eq.s32.totalorder %s33_s17, 0 }
   0xd   : > { %p518_p8 = por %p52_p5, %p51_p3  ;;  %p83_p10 = scmp.eq.s32.totalorder %s269_s13, 1 }
   0xe   : > { %p522_p9 = por %p77_p6, %p45_p1  ;;  %p293_p13 = scmp.lt.s32.totalorder %s457_s11, 2 }
   0xf   : > { %s527_s20 = scalar_select %p36_p7, %s445_s8, %s38_s15  }
  0x10   : > { %s651_s19 = scalar_select %p522_p9, 1, 0 }
  0x11   : > { %p529_p11 = por %p83_p10, %p51_p3  ;;  %s103_s22 = sand.u32 1, %s445_s8  }
  0x12   : > { %s272_s23 = sshll.u32 %s103_s22, 2  ;;  %s273_s24 = sshll.u32 %s453_s10, 6 }
  0x13   : > { %s652_s21 = scalar_select %p529_p11, 1, 0 }
  0x14   : > { %s540_s27 = scalar_lea.hbm %s646_s0, %s273_s24  ;;  %s107_s28 = scalar_lea.vmem [#allocation2], %s272_s23 }
  0x15   : > { %s115_s29 = sshll.u32 %s107_s28, 4  ;;  %p546_p0 = pnand %p293_p13, %p512_p4  ;;  %s542_s29 = int_to_ptr.vmem [resolvable:$true] %s115_s29 }
  0x16   : > { %s104_s2 = scalar_lea.sflag [#allocation3], %s103_s22  ;;  %s345_s3 = scalar_lea.hbm %s540_s27, 64 }
  0x17   : > { %p346_p3 = scmp.ne.s32.totalorder %s540_s27, %s345_s3  ;;  %p347_p5 = pneg %p546_p0 }
  0x18   : > { %s350_s12 = scalar_lea.hbm %s646_s0, 128  ;;  %p351_p4 = scmp.lt.u32.totalorder %s540_s27, %s646_s0 }
  0x19   : > { %p348_p6 = pnand %p347_p5, %p346_p3  ;;  %p352_p10 = scmp.lt.u32.totalorder %s350_s12, %s345_s3 }
  0x1a   : > { %p354_p12 = scmp.lt.u32.totalorder %s345_s3, %s540_s27 }
  0x1b   : > { %p349_p7 = pneg %p348_p6  ;;  %p353_p13 = por %p352_p10, %p351_p4 }
  0x1d   : > { %p355_p1 = por %p354_p12, %p353_p13 }
  0x1f   : > { %p356_p2 = pnand %p355_p1, %p349_p7 }
  0x21   : > { %359 = shalt.err (!%p356_p2)
}
  0x22   : > { %s360_s16 = scalar_lea.vmem %s542_s29, 64  ;;  %s459_s17 = smov [#allocation2]  }
  0x23   : > { %p361_p3 = scmp.ne.s32.totalorder %s542_s29, %s360_s16  ;;  %s365_s22 = sshll.u32 %s459_s17, 4  ;;  %s366_s22 = int_to_ptr.vmem [resolvable:$false] %s365_s22 }
  0x24   : > { %s367_s23 = scalar_lea.vmem %s366_s22, 128  ;;  %p368_p9 = scmp.lt.s32.totalorder %s542_s29, %s366_s22 }
  0x25   : > { %p363_p6 = pnand %p361_p3, %p347_p5  ;;  %p369_p4 = scmp.lt.s32.totalorder %s367_s23, %s360_s16 }
  0x27   : > { %p364_p11 = pneg %p363_p6  ;;  %p370_p10 = por %p369_p4, %p368_p9 }
  0x29   : > { %p371_p12 = pnand %p370_p10, %p364_p11 }
  0x2b   : > { %374 = shalt.err (!%p371_p12)
}
  0x2c   : > { %288 = dma.hbm_to_vmem [thread:$0]  (!%p546_p0), %s540_s27, 64, %s542_s29, %s104_s2  }
  0x2d   : > { %p654_p1 = scmp.lt.s32.totalorder %s457_s11, 3  ;;  %p655_p2 = scmp.ge.s32.totalorder %s457_s11, 1 }
  0x2f   : > { %p121_p5 = pnand %p655_p2, %p654_p1 }
  0x30   : > { %s582_s24 = sand.u32 (!%p121_p5), 1, %s441_s7  }
  0x31   : > { %124 = sbr.rel (%p121_p5) target bundleno = 121 (0x79), region = 24  ;;  %s275_s25 = sshll.u32 (!%p121_p5), %s582_s24, 2 }
  0x32   : > { %s127_s26 = scalar_lea.sflag (!%p121_p5), [#allocation3], %s582_s24  ;;  %s130_s28 = scalar_lea.vmem (!%p121_p5), [#allocation2], %s275_s25 }
  0x38   : > { %428 = dma.done.wait (%p518_p8), %s127_s26, 64  }
  0x39   : > { %430 = vsyncadd (%p518_p8), %s127_s26, 4294967232  ;;  %vm150_vm0 = vcmask 125952   ;;  %v149_v0 = vld [vmem:[%s130_s28] sm:$0xf]  ;;  %s148_s18 = scalar_lea.vmem [#allocation5], %s275_s25  ;;  %s278_s29 = sshll.u32 %s449_s9, 6 }
  0x3a   : > { %v151_v1 = vsel %vm150_vm0, %v149_v0, 0.0  ;;  %s188_s27 = sshll.u32 %s148_s18, 4  ;;  %s598_s3 = scalar_lea.hbm %s647_s1, %s278_s29  ;;  %s593_s27 = int_to_ptr.vmem [resolvable:$true] %s188_s27 }
  0x3b   : > { %v152_v2 = vrot.slane %v151_v1, 4  ;;  %s174_s4 = scalar_lea.sflag [#allocation4], %s582_s24  ;;  %s375_s5 = scalar_lea.vmem %s593_s27, 64 }
  0x3c   : > { %p376_p8 = scmp.ne.s32.totalorder %s593_s27, %s375_s5  ;;  %p656_p9 = scmp.ne.s32.totalorder %s651_s19, 0 }
  0x3d   : > { %v153_v3 = vadd.f32 %v152_v2, %v151_v1  ;;  %s460_s9 = smov [#allocation5]  }
  0x3e   : > { %p377_p11 = pnand %p376_p8, %p656_p9  ;;  %s379_s12 = sshll.u32 %s460_s9, 4  ;;  %s380_s12 = int_to_ptr.vmem [resolvable:$false] %s379_s12 }
  0x3f   : > { %v154_v4 = vrot.slane %v153_v3, 2  ;;  %s381_s13 = scalar_lea.vmem %s380_s12, 128  ;;  %p382_p7 = scmp.lt.s32.totalorder %s593_s27, %s380_s12 }
  0x40   : > { %p378_p0 = pneg %p377_p11  ;;  %p383_p13 = scmp.lt.s32.totalorder %s381_s13, %s375_s5 }
  0x41   : > { %v155_v5 = vadd.f32 %v154_v4, %v153_v3 }
  0x42   : > { %p384_p3 = por %p383_p13, %p382_p7 }
  0x43   : > { %v156_v6 = vrot.slane %v155_v5, 1 }
  0x44   : > { %p385_p6 = pnand %p384_p3, %p378_p0 }
  0x45   : > { %v157_v7 = vadd.f32 %v156_v6, %v155_v5 }
  0x47   : > { %v158_v8 = vmul.f32 0.25, %v157_v7 }
  0x49   : > { %v159_v9 = vsub.f32 %v149_v0, %v158_v8 }
  0x4b   : > { %v160_v10 = vmul.f32 %v159_v9, %v159_v9 }
  0x4d   : > { %v161_v11 = vsel %vm150_vm0, %v160_v10, 0.0 }
  0x4e   : > { %v162_v12 = vrot.slane %v161_v11, 4 }
  0x50   : > { %v163_v13 = vadd.f32 %v162_v12, %v161_v11 }
  0x52   : > { %v164_v14 = vrot.slane %v163_v13, 2 }
  0x54   : > { %v165_v15 = vadd.f32 %v164_v14, %v163_v13 }
  0x56   : > { %v166_v16 = vrot.slane %v165_v15, 1 }
  0x58   : > { %v167_v17 = vadd.f32 %v166_v16, %v165_v15 }
  0x5a   : > { %v168_v18 = vmul.f32 0.25, %v167_v17 }
  0x5c   : > { %v169_v19 = vadd.f32 1e-05, %v168_v18 }
  0x5e   : > { %343 = vrsqrt.f32 %v169_v19 }
  0x68   : > { %v344_v20 = vpop.eup %343 }
  0x69   : > { %v171_v21 = vmul.f32 %v344_v20, %v159_v9 }
  0x6b   : > { %172 = vst.msk [vmem:[%s148_s18] sm:$0xf] %vm150_vm0, %v171_v21 }
  0x6c   : > { %388 = shalt.err (!%p385_p6)
}
  0x6d   : > { %s389_s15 = scalar_lea.hbm %s598_s3, 64  ;;  %s393_s22 = scalar_lea.hbm %s647_s1, 128 }
  0x6e   : > { %p390_p4 = scmp.ne.s32.totalorder %s598_s3, %s389_s15  ;;  %p394_p1 = scmp.lt.u32.totalorder %s598_s3, %s647_s1 }
  0x6f   : > { %p395_p2 = scmp.lt.u32.totalorder %s393_s22, %s389_s15  ;;  %p397_p8 = scmp.lt.u32.totalorder %s389_s15, %s598_s3 }
  0x70   : > { %p391_p10 = pnand %p390_p4, %p656_p9 }
  0x71   : > { %p396_p5 = por %p395_p2, %p394_p1 }
  0x72   : > { %p392_p12 = pneg %p391_p10 }
  0x73   : > { %p398_p11 = por %p397_p8, %p396_p5 }
  0x75   : > { %p399_p0 = pnand %p398_p11, %p392_p12 }
  0x77   : > { %402 = shalt.err (!%p399_p0)
}
  0x78   : > { %283 = dma.vmem_to_hbm [thread:$0]  (%p656_p9), %s593_s27, 64, %s598_s3, %s174_s4  }
  0x79 PF: > { %s200_s25 = sand.u32 1, %s437_s6   ;;  %p657_p7 = scmp.ne.s32.totalorder %s652_s21, 0 }
  0x7a   : > { %p658_p13 = scmp.ge.s32.totalorder %s457_s11, 2  ;;  %s201_s26 = scalar_lea.sflag [#allocation4], %s200_s25 }
  0x7c   : > { %p290_p3 = pnand %p658_p13, %p657_p7 }
  0x7e   : > { %432 = dma.done.wait (!%p290_p3), %s201_s26, 64  }
  0x7f   : > { %434 = vsyncadd (!%p290_p3), %s201_s26, 4294967232  ;;  %s17_s11 = sadd.s32 1, %s457_s11   ;;  %s659_s6 = smov %s441_s7 }
  0x80   : > { %p14_p6 = scmp.ge.s32.totalorder %s17_s11, 4   ;;  %s660_s7 = smov %s445_s8 }
  0x81   : > { %s661_s8 = smov %s527_s20  ;;  %s662_s9 = smov %s453_s10 }
  0x82   : > { %s663_s10 = smov %s665_s14  ;;  %16 = sbr.rel (!%p14_p6) target bundleno = 6 (0x6), region = 69 }
  0x89   :  { %206 = vsyncpa [#allocation3], 1 }
  0x8a   :  { %208 = vsyncpa [#allocation3 + $0x1], 1 }
  0x8b   :  { %209 = vsyncpa [#allocation4], 1 }
  0x8c   :  { %211 = vsyncpa [#allocation4 + $0x1], 1 }

</bundles_post_ra>
